<compile_context>
chip_gen: v7x
topology: tpu7x:2x2x1
jax: 0.10.0
libtpu: 0.0.40
codegen_flags: <defaults>
</compile_context>

<pallas_src>
import functools

import jax
import jax.numpy as jnp
from jax import lax
from jax.experimental import pallas as pl
from jax.experimental.pallas import tpu as pltpu


def _round_up(n, m):
    return ((n + m - 1) // m) * m


def _pick_batch_tile(B, max_tile=512):
    """Batch-tile heuristic: bound padding waste, keep >=2 grid steps for
    larger batches (both v7x TensorCores get work), cap the tile so the VMEM
    budget stays portable to v7x."""
    b8 = _round_up(B, 8)
    if b8 <= max_tile:
        if b8 >= 256:
            return _round_up((b8 + 1) // 2, 8)   # 2 grid steps, minimal waste
        return b8                                 # single tile, zero waste
    cands = [t for t in (1024, 512, 256, 128, 64, 32, 16, 8) if t <= max_tile]
    for t in cands:                               # largest tile with bounded waste
        if _round_up(B, t) - B <= max(B // 8, 8):
            return t
    return min(cands, key=lambda t: (_round_up(B, t) - B, -t))


# ---------------------------------------------------------------------------
# Pallas kernel
# ---------------------------------------------------------------------------
def _predictor_kernel(num_hidden, segments, *refs):
    # refs layout (per grid step):
    #   x_ref  : (TB, D_IN_PAD)      f32
    #   (w_i, b_i) * num_hidden      (K_PAD, O_PAD) param_dtype / (1, O_PAD) f32
    #   wh, bh                       fused [position|relation|field|0] heads
    #   out_ref: (TB, H_PAD)         f32 lane-dense probabilities
    idx = 0
    x_ref = refs[idx]; idx += 1
    hidden_wb = []
    for _ in range(num_hidden):
        hidden_wb.append((refs[idx], refs[idx + 1]))
        idx += 2
    wh_ref, bh_ref = refs[idx], refs[idx + 1]; idx += 2
    out_ref = refs[idx]

    # Hidden MLP: x = tanh(x @ W + b).  Zero-padded columns stay exactly 0
    # (tanh(0) == 0), so the 128-lane padding is numerically neutral.
    x = x_ref[...].astype(jnp.float32)
    for w_ref, b_ref in hidden_wb:
        w = w_ref[...]
        h = jnp.dot(x.astype(w.dtype), w, preferred_element_type=jnp.float32)
        x = jnp.tanh(h + b_ref[...])

    # Single fused head matmul -> one (TB, H_PAD) logits tile.
    wh = wh_ref[...]
    logits = jnp.dot(x.astype(wh.dtype), wh, preferred_element_type=jnp.float32)
    logits = logits + bh_ref[...]

    # Segment-wise softmax (position / relation / field) with ONE exp pass:
    #   1. broadcast each segment's max to its lanes,
    #   2. one exp over the whole tile (lanes outside every segment -> exp(-inf)=0),
    #   3. per-segment masked sums broadcast back as a per-lane denominator,
    #   4. one exact divide (exact normalization; kernel is not VPU/EUP-bound).
    col = lax.broadcasted_iota(jnp.int32, logits.shape, 1)
    masks = [(col >= start) & (col < start + size) for start, size in segments]
    in_any = masks[0]
    for m in masks[1:]:
        in_any = in_any | m

    seg_max = jnp.zeros_like(logits)
    for m in masks:
        mmax = jnp.max(jnp.where(m, logits, -jnp.inf), axis=-1, keepdims=True)
        seg_max = jnp.where(m, mmax, seg_max)

    e = jnp.exp(jnp.where(in_any, logits - seg_max, -jnp.inf))

    denom = jnp.ones_like(logits)            # 1 outside segments -> 0/1 = 0
    for m in masks:
        d = jnp.sum(jnp.where(m, e, 0.0), axis=-1, keepdims=True)
        denom = jnp.where(m, d, denom)

    out_ref[...] = e / denom                 # single lane-dense (TB, H_PAD) store


# ---------------------------------------------------------------------------
# One-time parameter preparation (hoisted out of the forward path)
# ---------------------------------------------------------------------------
def prepare_predictor_params(hidden_params, head_params, *, param_dtype=jnp.float32):
    """Pads weights to 128-lane multiples and fuses the 3 heads ONCE.

    The returned dict is reused by every forward call, so the zero-fill /
    scatter work (and its HBM traffic) is paid at init, not per step.
    Set param_dtype=jnp.bfloat16 at BERT-scale dims to halve weight HBM/VMEM
    traffic (the MXU takes bf16 natively on all generations; accumulation and
    the tanh/softmax math stay f32 inside the kernel).
    """
    d_in = hidden_params[0][0].shape[0]
    d_in_pad = _round_up(d_in, 128)

    padded_hidden = []
    prev = d_in_pad
    for w, b in hidden_params:
        i_dim, o_dim = w.shape
        i_pad, o_pad = _round_up(i_dim, 128), _round_up(o_dim, 128)
        assert i_pad == prev, "consecutive layer dims must chain"
        wp = jnp.zeros((i_pad, o_pad), param_dtype).at[:i_dim, :o_dim].set(
            w.astype(param_dtype))
        bp = jnp.zeros((1, o_pad), jnp.float32).at[0, :o_dim].set(b)
        padded_hidden.append((wp, bp))
        prev = o_pad

    # Fuse the three heads: columns [position | relation | field | 0-pad].
    head_order = ("position", "relation", "field")
    widths = [head_params[n][0].shape[1] for n in head_order]
    starts, off = [], 0
    for wd in widths:
        starts.append(off)
        off += wd
    h_pad = _round_up(off, 128)
    d_last = head_params["position"][0].shape[0]
    d_last_pad = _round_up(d_last, 128)
    assert d_last_pad == prev

    wh = jnp.zeros((d_last_pad, h_pad), param_dtype)
    bh = jnp.zeros((1, h_pad), jnp.float32)
    for name, st in zip(head_order, starts):
        w, b = head_params[name]
        wh = wh.at[: w.shape[0], st:st + w.shape[1]].set(w.astype(param_dtype))
        bh = bh.at[0, st:st + w.shape[1]].set(b)

    segments = tuple((int(st), int(wd)) for st, wd in zip(starts, widths))
    return {
        "hidden": tuple(padded_hidden),
        "wh": wh, "bh": bh,
        "segments": segments,
        "d_in": int(d_in), "d_in_pad": int(d_in_pad), "h_pad": int(h_pad),
    }


# ---------------------------------------------------------------------------
# Forward wrapper
# ---------------------------------------------------------------------------
def relationship_predictor_forward(feature_pieces, params, *, max_batch_tile=512):
    """Runs the tanh MLP + fused 3-head softmax in one grid-tiled Pallas call.

    feature_pieces: sequence of (B, d_k) arrays whose concatenation along axis 1
        is the module's x = cat([ut_emb, prev_ut_emb, em_emb, prev_em_emb]).
        They are written directly into the padded kernel input (one
        materialization instead of concatenate + re-pad).
    params: output of prepare_predictor_params (padding / fusion already done).
    Returns (field_out, position_out, relation_out), like the PyTorch forward.
    """
    hidden = params["hidden"]
    wh, bh = params["wh"], params["bh"]
    segments = params["segments"]
    d_in, d_in_pad, h_pad = params["d_in"], params["d_in_pad"], params["h_pad"]

    B = feature_pieces[0].shape[0]
    tb = _pick_batch_tile(B, max_batch_tile)
    b_pad = _round_up(B, tb)

    # Single materialization of the padded input: each feature piece is written
    # straight into the zero-padded (b_pad, d_in_pad) buffer.
    x_pad = jnp.zeros((b_pad, d_in_pad), jnp.float32)
    off = 0
    for piece in feature_pieces:
        x_pad = lax.dynamic_update_slice(x_pad, piece.astype(jnp.float32), (0, off))
        off += piece.shape[1]
    assert off == d_in, "feature pieces must concatenate to sizes[0]"

    # Grid-invariant params: constant index_map -> DMA'd once, VMEM-resident.
    # Request single-buffering only once their footprint is big enough for
    # double-buffering to matter (BERT-scale dims); guarded for compatibility.
    resident_bytes = sum(int(w.size) * w.dtype.itemsize + int(b.size) * b.dtype.itemsize
                         for w, b in hidden)
    resident_bytes += int(wh.size) * wh.dtype.itemsize + int(bh.size) * bh.dtype.itemsize
    single_buffer = resident_bytes > (2 << 20)

    def _param_spec(shape):
        if single_buffer and hasattr(pl, "Buffered"):
            try:
                return pl.BlockSpec(shape, lambda i: (0, 0),
                                    pipeline_mode=pl.Buffered(1))
            except TypeError:   # older BlockSpec signature
                pass
        return pl.BlockSpec(shape, lambda i: (0, 0))

    args = [x_pad]
    in_specs = [pl.BlockSpec((tb, d_in_pad), lambda i: (i, 0))]
    for wp, bp in hidden:
        args += [wp, bp]
        in_specs += [_param_spec(wp.shape), _param_spec(bp.shape)]
    args += [wh, bh]
    in_specs += [_param_spec(wh.shape), _param_spec(bh.shape)]
    out_specs = pl.BlockSpec((tb, h_pad), lambda i: (i, 0))

    # VMEM budget (portable to v7x: 64 MiB physical / 32 MiB default scoped):
    # double-buffered x/out tiles + (single- or double-buffered) weights.
    vmem_needed = 2 * 4 * tb * (d_in_pad + h_pad) \
        + (1 if single_buffer else 2) * resident_bytes
    vmem_limit = None
    if vmem_needed > (28 << 20):
        vmem_limit = min(vmem_needed + (8 << 20), 60 << 20)

    # Advisory cost estimate for the XLA scheduler.
    flops = 2 * b_pad * (sum(w.shape[0] * w.shape[1] for w, _ in hidden)
                         + wh.shape[0] * wh.shape[1])
    transcendentals = b_pad * (sum(w.shape[1] for w, _ in hidden) + h_pad)
    bytes_accessed = x_pad.size * 4 + resident_bytes + b_pad * h_pad * 4
    cost = pl.CostEstimate(flops=int(flops), transcendentals=int(transcendentals),
                           bytes_accessed=int(bytes_accessed))

    kernel = functools.partial(_predictor_kernel, len(hidden), segments)

    out_pad = pl.pallas_call(
        kernel,
        out_shape=jax.ShapeDtypeStruct((b_pad, h_pad), jnp.float32),
        grid=(b_pad // tb,),
        in_specs=in_specs,
        out_specs=out_specs,
        compiler_params=pltpu.CompilerParams(
            dimension_semantics=("parallel",),   # batch axis shards across v7x's 2 TCs
            vmem_limit_bytes=vmem_limit),
        cost_estimate=cost,
    )(*args)

    # Slice the lane-dense output back into the three heads (trim batch pad).
    (p_st, p_w), (r_st, r_w), (f_st, f_w) = segments
    position_out = out_pad[:B, p_st:p_st + p_w]
    relation_out = out_pad[:B, r_st:r_st + r_w]
    field_out = out_pad[:B, f_st:f_st + f_w]
    return field_out, position_out, relation_out


# ---------------------------------------------------------------------------
# Deterministic parameter init (xavier_uniform like the module's __init__)
# ---------------------------------------------------------------------------
def xavier_uniform(key, in_dim, out_dim):
    limit = jnp.sqrt(6.0 / (in_dim + out_dim))
    # stored directly as (in, out) for x @ W  (== PyTorch x @ W_pt.T)
    return jax.random.uniform(key, (in_dim, out_dim), jnp.float32, -limit, limit)


if __name__ == "__main__":
    # Small synthetic config consistent with the module.
    batch = 8
    plm_dim = 32          # BERT pooled output dim (small synthetic)
    em_emb_dim = 16
    num_emotions = 7
    sizes = [2 * plm_dim + 2 * em_emb_dim, 64, 32]   # concat dim -> hidden sizes
    num_positions = 4
    num_relations = 5
    num_fields = 3

    root = jax.random.PRNGKey(0)
    keys = jax.random.split(root, 16)

    # TODO(synk): BertModel pooled outputs have no Pallas equivalent here; they
    # are modeled as precomputed utterance embeddings.
    ut_emb = jax.random.normal(keys[0], (batch, plm_dim), jnp.float32)
    prev_ut_emb = jax.random.normal(keys[1], (batch, plm_dim), jnp.float32)

    emotion_table = jax.random.normal(keys[2], (num_emotions, em_emb_dim), jnp.float32)
    emotions = jax.random.randint(keys[3], (batch,), 0, num_emotions)
    prev_emotions = jax.random.randint(keys[4], (batch,), 0, num_emotions)

    # Embedding lookups (glue, plain JAX).
    em_emb = jnp.take(emotion_table, emotions, axis=0)
    prev_em_emb = jnp.take(emotion_table, prev_emotions, axis=0)

    # MLP layers (xavier_uniform weights, zero biases for a deterministic test).
    hidden_params = []
    kidx = 5
    for s1, s2 in zip(sizes[:-1], sizes[1:]):
        w = xavier_uniform(keys[kidx], s1, s2); kidx += 1
        b = jnp.zeros((s2,), jnp.float32)
        hidden_params.append((w, b))

    def head(key, out_dim):
        return (xavier_uniform(key, sizes[-1], out_dim),
                jnp.zeros((out_dim,), jnp.float32))

    head_params = {
        "position": head(keys[kidx], num_positions),
        "relation": head(keys[kidx + 1], num_relations),
        "field": head(keys[kidx + 2], num_fields),
    }

    # Pad / fuse weights ONCE (hoisted out of the per-call forward path).
    params = prepare_predictor_params(hidden_params, head_params)

    pieces = (ut_emb, prev_ut_emb, em_emb, prev_em_emb)
    field_out, position_out, relation_out = relationship_predictor_forward(pieces, params)
    jax.block_until_ready((field_out, position_out, relation_out))

    assert field_out.shape == (batch, num_fields)
    assert position_out.shape == (batch, num_positions)
    assert relation_out.shape == (batch, num_relations)

    # Pure-JAX reference (HIGHEST matmul precision so the comparison is not
    # polluted by the reference's own default-precision matmuls on TPU).
    def ref_forward(pieces):
        h = jnp.concatenate(pieces, axis=1)
        for w, b in hidden_params:
            h = jnp.tanh(jnp.dot(h, w, precision=lax.Precision.HIGHEST) + b)

        def sm(w, b):
            return jax.nn.softmax(jnp.dot(h, w, precision=lax.Precision.HIGHEST) + b,
                                  axis=1)

        return (sm(*head_params["field"]),
                sm(*head_params["position"]),
                sm(*head_params["relation"]))

    rf, rp, rr = ref_forward(pieces)
    assert jnp.allclose(field_out, rf, atol=1e-4, rtol=1e-4)
    assert jnp.allclose(position_out, rp, atol=1e-4, rtol=1e-4)
    assert jnp.allclose(relation_out, rr, atol=1e-4, rtol=1e-4)
    # Exact divide in the epilogue -> each head's probabilities sum to 1.
    assert jnp.allclose(jnp.sum(field_out, axis=1), 1.0, atol=1e-5)
    assert jnp.allclose(jnp.sum(position_out, axis=1), 1.0, atol=1e-5)
    assert jnp.allclose(jnp.sum(relation_out, axis=1), 1.0, atol=1e-5)

    print("KERNEL_OK")
</pallas_src>

<mosaic_0001>
module attributes {stable_mosaic.version = 11 : i64} {
  func.func @_predictor_kernel(%arg0: i32, %arg1: memref<8x128xf32, #tpu.memory_space<vmem>>, %arg2: memref<128x128xf32, #tpu.memory_space<vmem>>, %arg3: memref<1x128xf32, #tpu.memory_space<vmem>>, %arg4: memref<128x128xf32, #tpu.memory_space<vmem>>, %arg5: memref<1x128xf32, #tpu.memory_space<vmem>>, %arg6: memref<128x128xf32, #tpu.memory_space<vmem>>, %arg7: memref<1x128xf32, #tpu.memory_space<vmem>>, %arg8: memref<8x128xf32, #tpu.memory_space<vmem>>) attributes {dimension_semantics = [#tpu.dimension_semantics<parallel>], iteration_bounds = array<i64: 1>, scalar_prefetch = 0 : i64, scratch_operands = 0 : i64, tpu.core_type = #tpu.core_type<tc>, window_params = [{transform_indices = @transform_0, window_bounds = array<i64: 8, 128>}, {pipeline_mode = #tpu.pipeline_mode<synchronous>, transform_indices = @transform_1, window_bounds = array<i64: 128, 128>}, {pipeline_mode = #tpu.pipeline_mode<synchronous>, transform_indices = @transform_2, window_bounds = array<i64: 1, 128>}, {pipeline_mode = #tpu.pipeline_mode<synchronous>, transform_indices = @transform_3, window_bounds = array<i64: 128, 128>}, {pipeline_mode = #tpu.pipeline_mode<synchronous>, transform_indices = @transform_4, window_bounds = array<i64: 1, 128>}, {pipeline_mode = #tpu.pipeline_mode<synchronous>, transform_indices = @transform_5, window_bounds = array<i64: 128, 128>}, {pipeline_mode = #tpu.pipeline_mode<synchronous>, transform_indices = @transform_6, window_bounds = array<i64: 1, 128>}, {transform_indices = @transform_7, window_bounds = array<i64: 8, 128>}]} {
    %c0 = arith.constant 0 : index
    %c0_0 = arith.constant 0 : index
    %0 = vector.load %arg1[%c0, %c0_0] : memref<8x128xf32, #tpu.memory_space<vmem>>, vector<8x128xf32>
    %c0_1 = arith.constant 0 : index
    %c0_2 = arith.constant 0 : index
    %1 = vector.load %arg2[%c0_1, %c0_2] : memref<128x128xf32, #tpu.memory_space<vmem>>, vector<128x128xf32>
    %cst = arith.constant dense<0.000000e+00> : vector<8x128xf32>
    %2 = tpu.matmul %0, %1, %cst {dimension_numbers = #tpu.dot_dimension_numbers<[1], [0], [0], [1], [0, 0, 1, 1], [], []>} : vector<8x128xf32>, vector<128x128xf32>, vector<8x128xf32> -> vector<8x128xf32>
    %c0_3 = arith.constant 0 : index
    %c0_4 = arith.constant 0 : index
    %3 = vector.load %arg3[%c0_3, %c0_4] : memref<1x128xf32, #tpu.memory_space<vmem>>, vector<1x128xf32>
    %4 = vector.broadcast %3 : vector<1x128xf32> to vector<8x128xf32>
    %5 = arith.addf %2, %4 : vector<8x128xf32>
    %6 = math.tanh %5 : vector<8x128xf32>
    %c0_5 = arith.constant 0 : index
    %c0_6 = arith.constant 0 : index
    %7 = vector.load %arg4[%c0_5, %c0_6] : memref<128x128xf32, #tpu.memory_space<vmem>>, vector<128x128xf32>
    %cst_7 = arith.constant dense<0.000000e+00> : vector<8x128xf32>
    %8 = tpu.matmul %6, %7, %cst_7 {dimension_numbers = #tpu.dot_dimension_numbers<[1], [0], [0], [1], [0, 0, 1, 1], [], []>} : vector<8x128xf32>, vector<128x128xf32>, vector<8x128xf32> -> vector<8x128xf32>
    %c0_8 = arith.constant 0 : index
    %c0_9 = arith.constant 0 : index
    %9 = vector.load %arg5[%c0_8, %c0_9] : memref<1x128xf32, #tpu.memory_space<vmem>>, vector<1x128xf32>
    %10 = vector.broadcast %9 : vector<1x128xf32> to vector<8x128xf32>
    %11 = arith.addf %8, %10 : vector<8x128xf32>
    %12 = math.tanh %11 : vector<8x128xf32>
    %c0_10 = arith.constant 0 : index
    %c0_11 = arith.constant 0 : index
    %13 = vector.load %arg6[%c0_10, %c0_11] : memref<128x128xf32, #tpu.memory_space<vmem>>, vector<128x128xf32>
    %cst_12 = arith.constant dense<0.000000e+00> : vector<8x128xf32>
    %14 = tpu.matmul %12, %13, %cst_12 {dimension_numbers = #tpu.dot_dimension_numbers<[1], [0], [0], [1], [0, 0, 1, 1], [], []>} : vector<8x128xf32>, vector<128x128xf32>, vector<8x128xf32> -> vector<8x128xf32>
    %c0_13 = arith.constant 0 : index
    %c0_14 = arith.constant 0 : index
    %15 = vector.load %arg7[%c0_13, %c0_14] : memref<1x128xf32, #tpu.memory_space<vmem>>, vector<1x128xf32>
    %16 = vector.broadcast %15 : vector<1x128xf32> to vector<8x128xf32>
    %17 = arith.addf %14, %16 : vector<8x128xf32>
    %18 = tpu.iota {dimensions = array<i32: 1>} : vector<8x128xi32>
    %c0_i32 = arith.constant 0 : i32
    %19 = vector.broadcast %c0_i32 : i32 to vector<8x128xi32>
    %20 = arith.cmpi sge, %18, %19 : vector<8x128xi32>
    %c4_i32 = arith.constant 4 : i32
    %21 = vector.broadcast %c4_i32 : i32 to vector<8x128xi32>
    %22 = arith.cmpi slt, %18, %21 : vector<8x128xi32>
    %23 = arith.andi %20, %22 : vector<8x128xi1>
    %c4_i32_15 = arith.constant 4 : i32
    %24 = vector.broadcast %c4_i32_15 : i32 to vector<8x128xi32>
    %25 = arith.cmpi sge, %18, %24 : vector<8x128xi32>
    %c9_i32 = arith.constant 9 : i32
    %26 = vector.broadcast %c9_i32 : i32 to vector<8x128xi32>
    %27 = arith.cmpi slt, %18, %26 : vector<8x128xi32>
    %28 = arith.andi %25, %27 : vector<8x128xi1>
    %c9_i32_16 = arith.constant 9 : i32
    %29 = vector.broadcast %c9_i32_16 : i32 to vector<8x128xi32>
    %30 = arith.cmpi sge, %18, %29 : vector<8x128xi32>
    %c12_i32 = arith.constant 12 : i32
    %31 = vector.broadcast %c12_i32 : i32 to vector<8x128xi32>
    %32 = arith.cmpi slt, %18, %31 : vector<8x128xi32>
    %33 = arith.andi %30, %32 : vector<8x128xi1>
    %34 = arith.ori %23, %28 : vector<8x128xi1>
    %35 = arith.ori %34, %33 : vector<8x128xi1>
    %cst_17 = arith.constant 0.000000e+00 : f32
    %36 = vector.broadcast %cst_17 : f32 to vector<8x128xf32>
    %cst_18 = arith.constant 0xFF800000 : f32
    %37 = vector.broadcast %cst_18 : f32 to vector<8x128xf32>
    %38 = arith.select %23, %17, %37 : vector<8x128xi1>, vector<8x128xf32>
    %cst_19 = arith.constant dense<0xFF800000> : vector<8xf32>
    %39 = vector.multi_reduction <maximumf>, %38, %cst_19 [1] : vector<8x128xf32> to vector<8xf32>
    %40 = vector.shape_cast %39 : vector<8xf32> to vector<8x1xf32>
    %41 = vector.shape_cast %40 : vector<8x1xf32> to vector<8x1xf32>
    %42 = vector.broadcast %41 : vector<8x1xf32> to vector<8x128xf32>
    %43 = arith.select %23, %42, %36 : vector<8x128xi1>, vector<8x128xf32>
    %cst_20 = arith.constant 0xFF800000 : f32
    %44 = vector.broadcast %cst_20 : f32 to vector<8x128xf32>
    %45 = arith.select %28, %17, %44 : vector<8x128xi1>, vector<8x128xf32>
    %cst_21 = arith.constant dense<0xFF800000> : vector<8xf32>
    %46 = vector.multi_reduction <maximumf>, %45, %cst_21 [1] : vector<8x128xf32> to vector<8xf32>
    %47 = vector.shape_cast %46 : vector<8xf32> to vector<8x1xf32>
    %48 = vector.shape_cast %47 : vector<8x1xf32> to vector<8x1xf32>
    %49 = vector.broadcast %48 : vector<8x1xf32> to vector<8x128xf32>
    %50 = arith.select %28, %49, %43 : vector<8x128xi1>, vector<8x128xf32>
    %cst_22 = arith.constant 0xFF800000 : f32
    %51 = vector.broadcast %cst_22 : f32 to vector<8x128xf32>
    %52 = arith.select %33, %17, %51 : vector<8x128xi1>, vector<8x128xf32>
    %cst_23 = arith.constant dense<0xFF800000> : vector<8xf32>
    %53 = vector.multi_reduction <maximumf>, %52, %cst_23 [1] : vector<8x128xf32> to vector<8xf32>
    %54 = vector.shape_cast %53 : vector<8xf32> to vector<8x1xf32>
    %55 = vector.shape_cast %54 : vector<8x1xf32> to vector<8x1xf32>
    %56 = vector.broadcast %55 : vector<8x1xf32> to vector<8x128xf32>
    %57 = arith.select %33, %56, %50 : vector<8x128xi1>, vector<8x128xf32>
    %58 = arith.subf %17, %57 : vector<8x128xf32>
    %cst_24 = arith.constant 0xFF800000 : f32
    %59 = vector.broadcast %cst_24 : f32 to vector<8x128xf32>
    %60 = arith.select %35, %58, %59 : vector<8x128xi1>, vector<8x128xf32>
    %61 = math.exp %60 : vector<8x128xf32>
    %cst_25 = arith.constant 1.000000e+00 : f32
    %62 = vector.broadcast %cst_25 : f32 to vector<8x128xf32>
    %cst_26 = arith.constant 0.000000e+00 : f32
    %63 = vector.broadcast %cst_26 : f32 to vector<8x128xf32>
    %64 = arith.select %23, %61, %63 : vector<8x128xi1>, vector<8x128xf32>
    %cst_27 = arith.constant dense<0.000000e+00> : vector<8xf32>
    %65 = vector.multi_reduction <add>, %64, %cst_27 [1] : vector<8x128xf32> to vector<8xf32>
    %66 = vector.shape_cast %65 : vector<8xf32> to vector<8x1xf32>
    %67 = vector.shape_cast %66 : vector<8x1xf32> to vector<8x1xf32>
    %68 = vector.broadcast %67 : vector<8x1xf32> to vector<8x128xf32>
    %69 = arith.select %23, %68, %62 : vector<8x128xi1>, vector<8x128xf32>
    %cst_28 = arith.constant 0.000000e+00 : f32
    %70 = vector.broadcast %cst_28 : f32 to vector<8x128xf32>
    %71 = arith.select %28, %61, %70 : vector<8x128xi1>, vector<8x128xf32>
    %cst_29 = arith.constant dense<0.000000e+00> : vector<8xf32>
    %72 = vector.multi_reduction <add>, %71, %cst_29 [1] : vector<8x128xf32> to vector<8xf32>
    %73 = vector.shape_cast %72 : vector<8xf32> to vector<8x1xf32>
    %74 = vector.shape_cast %73 : vector<8x1xf32> to vector<8x1xf32>
    %75 = vector.broadcast %74 : vector<8x1xf32> to vector<8x128xf32>
    %76 = arith.select %28, %75, %69 : vector<8x128xi1>, vector<8x128xf32>
    %cst_30 = arith.constant 0.000000e+00 : f32
    %77 = vector.broadcast %cst_30 : f32 to vector<8x128xf32>
    %78 = arith.select %33, %61, %77 : vector<8x128xi1>, vector<8x128xf32>
    %cst_31 = arith.constant dense<0.000000e+00> : vector<8xf32>
    %79 = vector.multi_reduction <add>, %78, %cst_31 [1] : vector<8x128xf32> to vector<8xf32>
    %80 = vector.shape_cast %79 : vector<8xf32> to vector<8x1xf32>
    %81 = vector.shape_cast %80 : vector<8x1xf32> to vector<8x1xf32>
    %82 = vector.broadcast %81 : vector<8x1xf32> to vector<8x128xf32>
    %83 = arith.select %33, %82, %76 : vector<8x128xi1>, vector<8x128xf32>
    %84 = arith.divf %61, %83 : vector<8x128xf32>
    %c0_32 = arith.constant 0 : index
    %c0_33 = arith.constant 0 : index
    %85 = vector.load %arg8[%c0_32, %c0_33] : memref<8x128xf32, #tpu.memory_space<vmem>>, vector<8x128xf32>
    tpu.vector_store %arg8[%c0_32, %c0_33], %84 {strides = array<i32>} : memref<8x128xf32, #tpu.memory_space<vmem>>, vector<8x128xf32>,
    return
  }
  func.func @transform_0(%arg0: i32) -> (i32, i32) {
    %c0_i32 = arith.constant 0 : i32
    %c0_i32_0 = arith.constant 0 : i32
    return %arg0, %c0_i32 : i32, i32
  }
  func.func @transform_1(%arg0: i32) -> (i32, i32) {
    %c0_i32 = arith.constant 0 : i32
    %c0_i32_0 = arith.constant 0 : i32
    %c0_i32_1 = arith.constant 0 : i32
    return %c0_i32, %c0_i32_0 : i32, i32
  }
  func.func @transform_2(%arg0: i32) -> (i32, i32) {
    %c0_i32 = arith.constant 0 : i32
    %c0_i32_0 = arith.constant 0 : i32
    %c0_i32_1 = arith.constant 0 : i32
    return %c0_i32, %c0_i32_0 : i32, i32
  }
  func.func @transform_3(%arg0: i32) -> (i32, i32) {
    %c0_i32 = arith.constant 0 : i32
    %c0_i32_0 = arith.constant 0 : i32
    %c0_i32_1 = arith.constant 0 : i32
    return %c0_i32, %c0_i32_0 : i32, i32
  }
  func.func @transform_4(%arg0: i32) -> (i32, i32) {
    %c0_i32 = arith.constant 0 : i32
    %c0_i32_0 = arith.constant 0 : i32
    %c0_i32_1 = arith.constant 0 : i32
    return %c0_i32, %c0_i32_0 : i32, i32
  }
  func.func @transform_5(%arg0: i32) -> (i32, i32) {
    %c0_i32 = arith.constant 0 : i32
    %c0_i32_0 = arith.constant 0 : i32
    %c0_i32_1 = arith.constant 0 : i32
    return %c0_i32, %c0_i32_0 : i32, i32
  }
  func.func @transform_6(%arg0: i32) -> (i32, i32) {
    %c0_i32 = arith.constant 0 : i32
    %c0_i32_0 = arith.constant 0 : i32
    %c0_i32_1 = arith.constant 0 : i32
    return %c0_i32, %c0_i32_0 : i32, i32
  }
  func.func @transform_7(%arg0: i32) -> (i32, i32) {
    %c0_i32 = arith.constant 0 : i32
    %c0_i32_0 = arith.constant 0 : i32
    return %arg0, %c0_i32 : i32, i32
  }
}

</mosaic_0001>

<bundles_post_ra>
// kernel: tpu_custom_call.1
= control target key start
LH: loop header
LB: loop body
LE: loop exit
PB: predicated region body
PF: predicated region fallthrough
CT: control target
= control target key end

     0   :  { %12 = vsyncpa [#allocation3], 0  ;;  %s981_s0 = inlined_call_operand.hbm [shape: f32[8,128], index: 0, kind: input, shape index: {}]   ;;  %s982_s1 = inlined_call_operand.hbm [shape: f32[128,128], index: 1, kind: input, shape index: {}]   ;;  %s983_s2 = inlined_call_operand.vmem [shape: f32[1,128], index: 2, kind: input, shape index: {}]   ;;  %s984_s3 = inlined_call_operand.hbm [shape: f32[128,128], index: 3, kind: input, shape index: {}]   ;;  %s985_s4 = inlined_call_operand.vmem [shape: f32[1,128], index: 4, kind: input, shape index: {}]   ;;  %s986_s5 = inlined_call_operand.hbm [shape: f32[128,128], index: 5, kind: input, shape index: {}]   ;;  %s987_s6 = inlined_call_operand.vmem [shape: f32[1,128], index: 6, kind: input, shape index: {}]   ;;  %s988_s7 = inlined_call_operand.hbm [shape: f32[8,128], index: 7, kind: output, shape index: {}]  }
   0x1   :  { %13 = vsyncpa [#allocation6], 0 }
   0x2   :  { %14 = vsyncpa [#allocation9], 0 }
   0x3   :  { %15 = vsyncpa [#allocation4], 0  ;;  %s790_s24 = smov [#allocation5]   ;;  %s672_s28 = scalar_lea.hbm %s982_s1, 2048 }
   0x4   :  { %s31_s25 = sshll.u32 %s790_s24, 4  ;;  %p673_p0 = scmp.ne.s32.totalorder %s982_s1, %s672_s28  ;;  %s32_s25 = int_to_ptr.vmem [resolvable:$true] %s31_s25 }
   0x5   :  { %p676_p1 = scmp.lt.u32.totalorder %s672_s28, %s982_s1 }
   0x7   :  { %p678_p2 = pnand %p676_p1, %p673_p0 }
   0x9   :  { %681 = shalt.err (!%p678_p2)
}
   0xa   :  { %s682_s10 = scalar_lea.vmem %s32_s25, 2048  ;;  %p687_p4 = scmp.lt.s32.totalorder %s32_s25, %s32_s25 }
   0xb   :  { %p683_p3 = scmp.ne.s32.totalorder %s32_s25, %s682_s10  ;;  %p688_p5 = scmp.lt.s32.totalorder %s682_s10, %s682_s10 }
   0xd   :  { %p689_p6 = por %p688_p5, %p687_p4 }
   0xf   :  { %p690_p7 = pnand %p689_p6, %p683_p3 }
  0x11   :  { %693 = shalt.err (!%p690_p7)
}
  0x12   :  { %s791_s11 = smov 128   ;;  %s792_s12 = smov 8  }
  0x13   :  { %37 = dma.hbm_to_vmem [thread:$0]  %s982_s1, 2048, %s32_s25, [#allocation6], %s791_s11, %s791_s11, %s792_s12  }
  0x14   :  { %s793_s15 = smov [#allocation2]   ;;  %s794_s17 = smov [#allocation7]  }
  0x15   :  { %s22_s16 = sshll.u32 %s793_s15, 4  ;;  %s45_s18 = sshll.u32 %s794_s17, 4  ;;  %s23_s16 = int_to_ptr.vmem [resolvable:$true] %s22_s16  ;;  %s46_s18 = int_to_ptr.vmem [resolvable:$true] %s45_s18 }
  0x16   :  { %s694_s21 = scalar_lea.hbm %s981_s0, 128 }
  0x17   :  { %p695_p8 = scmp.ne.s32.totalorder %s981_s0, %s694_s21  ;;  %p698_p9 = scmp.lt.u32.totalorder %s694_s21, %s981_s0 }
  0x19   :  { %p700_p10 = pnand %p698_p9, %p695_p8 }
  0x1b   :  { %703 = shalt.err (!%p700_p10)
}
  0x1c   :  { %s704_s1 = scalar_lea.vmem %s23_s16, 128  ;;  %p709_p12 = scmp.lt.s32.totalorder %s23_s16, %s23_s16 }
  0x1d   :  { %p705_p11 = scmp.ne.s32.totalorder %s23_s16, %s704_s1  ;;  %p710_p13 = scmp.lt.s32.totalorder %s704_s1, %s704_s1 }
  0x1f   :  { %p711_p0 = por %p710_p13, %p709_p12 }
  0x21   :  { %p712_p1 = pnand %p711_p0, %p705_p11 }
  0x23   :  { %715 = shalt.err (!%p712_p1)
}
  0x24   :  { %25 = dma.hbm_to_vmem [thread:$0]  %s981_s0, 128, %s23_s16, [#allocation3]  }
  0x25   :  { %s716_s30 = scalar_lea.hbm %s984_s3, 2048 }
  0x26   :  { %p717_p2 = scmp.ne.s32.totalorder %s984_s3, %s716_s30  ;;  %p720_p3 = scmp.lt.u32.totalorder %s716_s30, %s984_s3 }
  0x28   :  { %p722_p4 = pnand %p720_p3, %p717_p2 }
  0x2a   :  { %725 = shalt.err (!%p722_p4)
}
  0x2b   :  { %s726_s14 = scalar_lea.vmem %s46_s18, 2048  ;;  %p731_p6 = scmp.lt.s32.totalorder %s46_s18, %s46_s18 }
  0x2c   :  { %p727_p5 = scmp.ne.s32.totalorder %s46_s18, %s726_s14  ;;  %p732_p7 = scmp.lt.s32.totalorder %s726_s14, %s726_s14 }
  0x2e   :  { %p733_p8 = por %p732_p7, %p731_p6 }
  0x30   :  { %p734_p9 = pnand %p733_p8, %p727_p5 }
  0x32   :  { %737 = shalt.err (!%p734_p9)
}
  0x33   :  { %51 = dma.hbm_to_vmem [thread:$0]  %s984_s3, 2048, %s46_s18, [#allocation6], %s791_s11, %s791_s11, %s792_s12  }
  0x34   :  { %s795_s16 = smov [#allocation8]   ;;  %s738_s21 = scalar_lea.hbm %s986_s5, 2048 }
  0x35   :  { %s59_s17 = sshll.u32 %s795_s16, 4  ;;  %p739_p10 = scmp.ne.s32.totalorder %s986_s5, %s738_s21  ;;  %s60_s17 = int_to_ptr.vmem [resolvable:$true] %s59_s17 }
  0x36   :  { %p742_p11 = scmp.lt.u32.totalorder %s738_s21, %s986_s5 }
  0x38   :  { %p744_p12 = pnand %p742_p11, %p739_p10 }
  0x3a   :  { %747 = shalt.err (!%p744_p12)
}
  0x3b   :  { %s748_s1 = scalar_lea.vmem %s60_s17, 2048  ;;  %p753_p0 = scmp.lt.s32.totalorder %s60_s17, %s60_s17 }
  0x3c   :  { %p749_p13 = scmp.ne.s32.totalorder %s60_s17, %s748_s1  ;;  %p754_p1 = scmp.lt.s32.totalorder %s748_s1, %s748_s1 }
  0x3e   :  { %p755_p2 = por %p754_p1, %p753_p0 }
  0x40   :  { %p756_p3 = pnand %p755_p2, %p749_p13 }
  0x42   :  { %759 = shalt.err (!%p756_p3)
}
  0x43   :  { %65 = dma.hbm_to_vmem [thread:$0]  %s986_s5, 2048, %s60_s17, [#allocation9], %s791_s11, %s791_s11, %s792_s12  }
  0x44   :  { %782 = dma.done.wait [#allocation3], 128  }
  0x45   :  { %783 = vsyncadd [#allocation3], 4294967168 }
  0x46   :  { %784 = dma.done.wait [#allocation6], 4096  }
  0x47   :  { %785 = vsyncadd [#allocation6], 4294963200 }
  0x48   :  { %786 = dma.done.wait [#allocation9], 2048  }
  0x49   :  { %787 = vsyncadd [#allocation9], 4294965248  ;;  %v796_v0 = vmov 0.0|0.0   ;;  %vm797_vm0 = vmmov 0   ;;  %v798_v1 = vmov 0.0   ;;  %v81_v2 = vld [vmem:[#allocation5] sm:$0xff] }
  0x4a   :  { %582 = vmatprep.subr.bf16.mxu0 %v796_v0  ;;  %509 = vmatprep.mubr.msk.f32.mxu0 %vm797_vm0, %v798_v1  ;;  %v82_v3 = vld [vmem:[#allocation5 + $0x8] sm:$0xff]  ;;  %v83_v4 = vld [vmem:[#allocation5 + $0x10] sm:$0xff]  ;;  %v84_v6 = vld [vmem:[#allocation5 + $0x18] sm:$0xff] }
  0x4b   :  { %606 = vmatprep.subr.bf16.mxu1 %v796_v0  ;;  %544 = vmatprep.mubr.msk.f32.mxu1 %vm797_vm0, %v798_v1  ;;  %v583_v5 = vpack.c.bf16 %v82_v3, %v81_v2  ;;  %v586_v7 = vpack.c.bf16 %v84_v6, %v83_v4  ;;  %v85_v8 = vld [vmem:[#allocation5 + $0x20] sm:$0xff]  ;;  %v86_v9 = vld [vmem:[#allocation5 + $0x28] sm:$0xff]  ;;  %v177_v12 = vld [vmem:[#allocation7 + $0x10] sm:$0xff] }
  0x4c   :  { %v175_v10 = vld [vmem:[#allocation7] sm:$0xff]  ;;  %v176_v11 = vld [vmem:[#allocation7 + $0x8] sm:$0xff]  ;;  %v178_v13 = vld [vmem:[#allocation7 + $0x18] sm:$0xff]  ;;  %v589_v14 = vpack.c.bf16 %v86_v9, %v85_v8 }
  0x4d   :  { %584 = vmatpush3.bf16.msra.mxu0 %v583_v5  ;;  %v607_v15 = vpack.c.bf16 %v176_v11, %v175_v10  ;;  %v87_v16 = vld [vmem:[#allocation5 + $0x30] sm:$0xff]  ;;  %v88_v17 = vld [vmem:[#allocation5 + $0x38] sm:$0xff]  ;;  %v610_v18 = vpack.c.bf16 %v178_v13, %v177_v12  ;;  %v179_v19 = vld [vmem:[#allocation7 + $0x20] sm:$0xff] }
  0x4e   :  { %585 = vmatprep.subr.bf16.mxu0 %v796_v0  ;;  %v180_v20 = vld [vmem:[#allocation7 + $0x28] sm:$0xff]  ;;  %v592_v21 = vpack.c.bf16 %v88_v17, %v87_v16  ;;  %v89_v22 = vld [vmem:[#allocation5 + $0x40] sm:$0xff]  ;;  %v181_v25 = vld [vmem:[#allocation7 + $0x30] sm:$0xff] }
  0x4f   :  { %608 = vmatpush3.bf16.msra.mxu1 %v607_v15  ;;  %v90_v23 = vld [vmem:[#allocation5 + $0x48] sm:$0xff]  ;;  %v613_v24 = vpack.c.bf16 %v180_v20, %v179_v19  ;;  %v182_v26 = vld [vmem:[#allocation7 + $0x38] sm:$0xff]  ;;  %v91_v28 = vld [vmem:[#allocation5 + $0x50] sm:$0xff] }
  0x50   :  { %609 = vmatprep.subr.bf16.mxu1 %v796_v0  ;;  %v595_v27 = vpack.c.bf16 %v90_v23, %v89_v22  ;;  %v92_v29 = vld [vmem:[#allocation5 + $0x58] sm:$0xff]  ;;  %v616_v30 = vpack.c.bf16 %v182_v26, %v181_v25  ;;  %v183_v31 = vld [vmem:[#allocation7 + $0x40] sm:$0xff]  ;;  %v184_v32 = vld [vmem:[#allocation7 + $0x48] sm:$0xff]  ;;  %v362_v22 = vlaneseq }
  0x51   :  { %587 = vmatpush3.bf16.msra.mxu0 %v586_v7  ;;  %v598_v33 = vpack.c.bf16 %v92_v29, %v91_v28  ;;  %v93_v34 = vld [vmem:[#allocation5 + $0x60] sm:$0xff]  ;;  %v94_v35 = vld [vmem:[#allocation5 + $0x68] sm:$0xff]  ;;  %v619_v36 = vpack.c.bf16 %v184_v32, %v183_v31  ;;  %v95_v38 = vld [vmem:[#allocation5 + $0x70] sm:$0xff] }
  0x52   :  { %588 = vmatprep.subr.bf16.mxu0 %v796_v0  ;;  %v601_v37 = vpack.c.bf16 %v94_v35, %v93_v34  ;;  %v96_v39 = vld [vmem:[#allocation5 + $0x78] sm:$0xff]  ;;  %v185_v42 = vld [vmem:[#allocation7 + $0x50] sm:$0xff]  ;;  %v187_v45 = vld [vmem:[#allocation7 + $0x60] sm:$0xff]  ;;  %v363_v23 = vand.u32 127, %v362_v22 }
  0x53   :  { %611 = vmatpush3.bf16.msra.mxu1 %v610_v18  ;;  %v604_v40 = vpack.c.bf16 %v96_v39, %v95_v38  ;;  %v80_v41 = vld [vmem:[#allocation2] sm:$0xff]  ;;  %v188_v46 = vld [vmem:[#allocation7 + $0x68] sm:$0xff]  ;;  %v189_v48 = vld [vmem:[#allocation7 + $0x70] sm:$0xff] }
  0x54   :  { %612 = vmatprep.subr.bf16.mxu1 %v796_v0  ;;  %v186_v43 = vld [vmem:[#allocation7 + $0x58] sm:$0xff]  ;;  %v625_v47 = vpack.c.bf16 %v188_v46, %v187_v45  ;;  %v269_v51 = vld [vmem:[#allocation8] sm:$0xff]  ;;  %v270_v52 = vld [vmem:[#allocation8 + $0x8] sm:$0xff]  ;;  %vm370_vm1 = vcmp.ge.s32.totalorder %v363_v23, 9  ;;  %vm371_vm2 = vcmp.lt.s32.totalorder %v363_v23, 12  ;;  %vm365_vm4 = vcmp.lt.s32.totalorder %v363_v23, 4 }
  0x55   :  { %590 = vmatpush3.bf16.msra.mxu0 %v589_v14  ;;  %v622_v44 = vpack.c.bf16 %v186_v43, %v185_v42  ;;  %v190_v49 = vld [vmem:[#allocation7 + $0x78] sm:$0xff]  ;;  %v271_v53 = vld [vmem:[#allocation8 + $0x10] sm:$0xff]  ;;  %v631_v54 = vpack.c.bf16 %v270_v52, %v269_v51  ;;  %v273_v57 = vld [vmem:[#allocation8 + $0x20] sm:$0xff]  ;;  %vm367_vm5 = vcmp.ge.s32.totalorder %v363_v23, 4  ;;  %vm368_vm6 = vcmp.lt.s32.totalorder %v363_v23, 9 }
  0x56   :  { %591 = vmatprep.subr.bf16.mxu0 %v796_v0  ;;  %v628_v50 = vpack.c.bf16 %v190_v49, %v189_v48  ;;  %v272_v55 = vld [vmem:[#allocation8 + $0x18] sm:$0xff]  ;;  %v274_v58 = vld [vmem:[#allocation8 + $0x28] sm:$0xff]  ;;  %v275_v60 = vld [vmem:[#allocation8 + $0x30] sm:$0xff] }
  0x57   :  { %614 = vmatpush3.bf16.msra.mxu1 %v613_v24  ;;  %v634_v56 = vpack.c.bf16 %v272_v55, %v271_v53  ;;  %v637_v59 = vpack.c.bf16 %v274_v58, %v273_v57  ;;  %v276_v61 = vld [vmem:[#allocation8 + $0x38] sm:$0xff]  ;;  %v277_v63 = vld [vmem:[#allocation8 + $0x40] sm:$0xff]  ;;  %v279_v8 = vld [vmem:[#allocation8 + $0x50] sm:$0xff] }
  0x58   :  { %615 = vmatprep.subr.bf16.mxu1 %v796_v0  ;;  %v640_v62 = vpack.c.bf16 %v276_v61, %v275_v60  ;;  %v423_v3 = vld [vmem:[%s983_s2] ss:$0 sm:$0xff]  ;;  %v281_v11 = vld [vmem:[#allocation8 + $0x60] sm:$0xff]  ;;  %v282_v12 = vld [vmem:[#allocation8 + $0x68] sm:$0xff] }
  0x59   :  { %593 = vmatpush3.bf16.msra.mxu0 %v592_v21  ;;  %v280_v9 = vld [vmem:[#allocation8 + $0x58] sm:$0xff]  ;;  %v649_v13 = vpack.c.bf16 %v282_v12, %v281_v11  ;;  %v283_v14 = vld [vmem:[#allocation8 + $0x70] sm:$0xff]  ;;  %vm936_vm3 = vmand %vm370_vm1, %vm371_vm2 }
  0x5a   :  { %594 = vmatprep.subr.bf16.mxu0 %v796_v0  ;;  %v646_v10 = vpack.c.bf16 %v280_v9, %v279_v8  ;;  %v284_v15 = vld [vmem:[#allocation8 + $0x78] sm:$0xff]  ;;  %vm943_vm7 = vmand %vm367_vm5, %vm368_vm6 }
  0x5b   :  { %617 = vmatpush3.bf16.msra.mxu1 %v616_v30  ;;  %v652_v16 = vpack.c.bf16 %v284_v15, %v283_v14  ;;  %v424_v17 = vld [vmem:[%s985_s4] ss:$0 sm:$0xff]  ;;  %vm373_vm8 = vmor %vm365_vm4, %vm943_vm7  ;;  %s799_s4 = smov [#allocation10]  }
  0x5c   :  { %618 = vmatprep.subr.bf16.mxu1 %v796_v0  ;;  %v425_v24 = vld [vmem:[%s987_s6] ss:$0 sm:$0xff]  ;;  %vm374_vm9 = vmor %vm373_vm8, %vm936_vm3  ;;  %s412_s6 = sshll.u32 %s799_s4, 4  ;;  %s413_s6 = int_to_ptr.vmem [resolvable:$true] %s412_s6 }
  0x5d   :  { %596 = vmatpush3.bf16.msra.mxu0 %v595_v27  ;;  %s760_s28 = scalar_lea.vmem %s413_s6, 128  ;;  %p765_p5 = scmp.lt.s32.totalorder %s413_s6, %s413_s6 }
  0x5e   :  { %597 = vmatprep.subr.bf16.mxu0 %v796_v0  ;;  %p761_p4 = scmp.ne.s32.totalorder %s413_s6, %s760_s28  ;;  %p766_p6 = scmp.lt.s32.totalorder %s760_s28, %s760_s28 }
  0x5f   :  { %620 = vmatpush3.bf16.msra.mxu1 %v619_v36 }
  0x60   :  { %621 = vmatprep.subr.bf16.mxu1 %v796_v0  ;;  %p767_p7 = por %p766_p6, %p765_p5 }
  0x61   :  { %599 = vmatpush3.bf16.msra.mxu0 %v598_v33 }
  0x62   :  { %600 = vmatprep.subr.bf16.mxu0 %v796_v0  ;;  %p768_p8 = pnand %p767_p7, %p761_p4 }
  0x63   :  { %623 = vmatpush3.bf16.msra.mxu1 %v622_v44 }
  0x64   :  { %624 = vmatprep.subr.bf16.mxu1 %v796_v0 }
  0x65   :  { %602 = vmatpush3.bf16.msra.mxu0 %v601_v37 }
  0x66   :  { %603 = vmatprep.subr.bf16.mxu0 %v796_v0 }
  0x67   :  { %626 = vmatpush3.bf16.msra.mxu1 %v625_v47 }
  0x68   :  { %627 = vmatprep.subr.bf16.mxu1 %v796_v0 }
  0x69   :  { %605 = vmatpush3.bf16.msra.mxu0 %v604_v40 }
  0x6a   :  { %630 = vmatprep.subr.bf16.mxu0 %v796_v0 }
  0x6b   :  { %629 = vmatpush3.bf16.msra.mxu1 %v628_v50 }
  0x6c   :  { %510 = vmatmul.mubr.f32.vlgmr.msra.gmra.mrb[0].mxu0 %v80_v41 }
  0x6d   :  { %579 = vmatprep.mubr.msk.f32.mxu0 %vm797_vm0, %v798_v1  ;;  %632 = vmatpush3.bf16.msra.mxu0 %v631_v54  ;;  %v278_v1 = vld [vmem:[#allocation8 + $0x48] sm:$0xff] }
  0x6e   :  { %633 = vmatprep.subr.bf16.mxu0 %v796_v0  ;;  %v643_v2 = vpack.c.bf16 %v278_v1, %v277_v63 }
  0x71   :  { %635 = vmatpush3.bf16.msra.mxu0 %v634_v56 }
  0x72   :  { %636 = vmatprep.subr.bf16.mxu0 %v796_v0 }
  0x75   :  { %638 = vmatpush3.bf16.msra.mxu0 %v637_v59 }
  0x76   :  { %639 = vmatprep.subr.bf16.mxu0 %v796_v0 }
  0x79   :  { %641 = vmatpush3.bf16.msra.mxu0 %v640_v62 }
  0x7a   :  { %642 = vmatprep.subr.bf16.mxu0 %v796_v0 }
  0x7d   :  { %644 = vmatpush3.bf16.msra.mxu0 %v643_v2 }
  0x7e   :  { %645 = vmatprep.subr.bf16.mxu0 %v796_v0 }
  0x81   :  { %647 = vmatpush3.bf16.msra.mxu0 %v646_v10 }
  0x82   :  { %648 = vmatprep.subr.bf16.mxu0 %v796_v0 }
  0x85   :  { %650 = vmatpush3.bf16.msra.mxu0 %v649_v13 }
  0x86   :  { %651 = vmatprep.subr.bf16.mxu0 %v796_v0 }
  0x89   :  { %653 = vmatpush3.bf16.msra.mxu0 %v652_v16 }
 0x13f   :  { %v170_v4 = vpop.f32.mrb[0].mxu0 }
 0x140   :  { %v171_v5 = vadd.f32 %v423_v3, %v170_v4  ;;  %v511_v6 = vpop.f32.mrb[1].mxu0 }
 0x142   :  { %664 = vtanh.f32 %v171_v5 }
 0x14c   :  { %v665_v7 = vpop.eup %664 }
 0x14d   :  { %545 = vmatmul.mubr.f32.vlgmr.msra.gmra.mrb[0].mxu1 %v665_v7 }
 0x220   :  { %v264_v18 = vpop.f32.mrb[0].mxu1 }
 0x221   :  { %v265_v19 = vadd.f32 %v424_v17, %v264_v18  ;;  %v546_v20 = vpop.f32.mrb[1].mxu1 }
 0x223   :  { %666 = vtanh.f32 %v265_v19 }
 0x22d   :  { %v667_v21 = vpop.eup %666 }
 0x22e   :  { %580 = vmatmul.mubr.f32.vlgmr.msra.gmra.mrb[2].mxu0 %v667_v21 }
 0x301   :  { %v358_v0 = vpop.f32.mrb[2].mxu0 }
 0x302   :  { %v359_v26 = vadd.f32 %v425_v24, %v358_v0  ;;  %v581_v27 = vpop.f32.mrb[3].mxu0 }
 0x304   :  { %v383_v28 = vsel %vm936_vm3, %v359_v26, -inf  ;;  %v375_v29 = vsel %vm365_vm4, %v359_v26, -inf  ;;  %v379_v31 = vsel %vm943_vm7, %v359_v26, -inf }
 0x305   :  { %384 = vmax.xlane.f32.xlu1 %v383_v28  ;;  %376 = vmax.xlane.f32.xlu0 %v375_v29 }
 0x309   :  { %380 = vmax.xlane.f32.xlu0 %v379_v31 }
 0x392   :  { %v377_v32 = vpop.xlane.xlu0 %376  ;;  %v385_v35 = vpop.xlane.xlu1 %384 }
 0x393   :  { %v378_v33 = vsel %vm365_vm4, %v377_v32, 0.0 }
 0x396   :  { %v381_v34 = vpop.xlane.xlu0 %380 }
 0x397   :  { %v382_v36 = vsel %vm943_vm7, %v381_v34, %v378_v33 }
 0x398   :  { %v386_v37 = vsel %vm936_vm3, %v385_v35, %v382_v36 }
 0x399   :  { %v387_v38 = vsub.f32 %v359_v26, %v386_v37 }
 0x39b   :  { %v388_v39 = vsel %vm374_vm9, %v387_v38, -inf }
 0x39c   :  { %v389_v40 = vmul.f32 1.442695, %v388_v39 }
 0x39e   :  { %668 = vpow2.f32 %v389_v40 }
 0x3a8   :  { %v669_v41 = vpop.eup %668 }
 0x3a9   :  { %v395_v42 = vsel %vm943_vm7, %v669_v41, 0.0  ;;  %v391_v43 = vsel %vm365_vm4, %v669_v41, 0.0  ;;  %v399_v44 = vsel %vm936_vm3, %v669_v41, 0.0 }
 0x3aa   :  { %396 = vadd.xlane.f32.xlu0 %v395_v42  ;;  %392 = vadd.xlane.f32.xlu1 %v391_v43 }
 0x3ae   :  { %400 = vadd.xlane.f32.xlu1 %v399_v44 }
 0x437   :  { %v393_v45 = vpop.xlane.xlu1 %392  ;;  %v397_v46 = vpop.xlane.xlu0 %396 }
 0x438   :  { %v394_v47 = vsel %vm365_vm4, %v393_v45, 1.0 }
 0x439   :  { %v398_v48 = vsel %vm943_vm7, %v397_v46, %v394_v47 }
 0x43b   :  { %v401_v49 = vpop.xlane.xlu1 %400 }
 0x43c   :  { %v402_v50 = vsel %vm936_vm3, %v401_v49, %v398_v48 }
 0x43d   :  { %670 = vrcp.f32 %v402_v50 }
 0x447   :  { %v671_v51 = vpop.eup %670 }
 0x448   :  { %v404_v52 = vmul.f32 %v671_v51, %v669_v41 }
 0x44a   :  { %405 = vst [vmem:[#allocation10] sm:$0xff] %v404_v52 }
 0x44b   :  { %771 = shalt.err (!%p768_p8)
}
 0x44c   :  { %s772_s8 = scalar_lea.hbm %s988_s7, 128 }
 0x44d   :  { %p773_p9 = scmp.ne.s32.totalorder %s988_s7, %s772_s8  ;;  %p776_p10 = scmp.lt.u32.totalorder %s772_s8, %s988_s7 }
 0x44f   :  { %p778_p11 = pnand %p776_p10, %p773_p9 }
 0x451   :  { %781 = shalt.err (!%p778_p11)
}
 0x452   :  { %415 = dma.vmem_to_hbm [thread:$0]  %s413_s6, 128, %s988_s7, [#allocation4]  }
 0x453   :  { %788 = dma.done.wait [#allocation4], 128  }
 0x454   :  { %789 = vsyncadd [#allocation4], 4294967168 }
 0x455   :  { %419 = vsyncpa [#allocation3], 1 }
 0x456   :  { %420 = vsyncpa [#allocation6], 1 }
 0x457   :  { %421 = vsyncpa [#allocation9], 1 }
 0x458   :  { %422 = vsyncpa [#allocation4], 1 }

</bundles_post_ra>
